<compile_context>
chip_gen: v5e
topology: v5e:2x2
jax: 0.10.0
libtpu: 0.0.40
codegen_flags: <defaults>
</compile_context>

<pallas_src>
import jax
import jax.numpy as jnp
from jax.experimental import pallas as pl
from jax.experimental.pallas import tpu as pltpu

# Hyperparameters implied by the module (hp.tr_dim, hp.compute_dim).
TR_DIM = 32
COMPUTE_DIM = 64

_PACK = 4          # rows per lane slab: 4*32=128 input lanes, 4*64=256 output lanes
_TILE_ROWS = 8192  # unpacked rows per grid step (review: 8-16K; v7x can go larger)


def _fc_tanh_kernel(x_ref, w_ref, b_ref, o_ref):
    # x_ref: (tmp, PACK*D)  w_ref: (PACK*D, PACK*N)  b_ref: (1, PACK*N)
    # Default matmul precision is fine here (K=32, O(1) values, err << 1e-5);
    # pass precision=jax.lax.Precision.HIGHEST if bit-parity with fp32 matters.
    acc = jnp.dot(x_ref[...], w_ref[...], preferred_element_type=jnp.float32)
    acc = acc + b_ref[...]                      # bias broadcast over rows
    # TODO(synk): on v7x confirm jnp.tanh lowers to a single EUP op in the
    # bundle dump; a multi-op lowering could make the EUP the binding slot
    # once bf16 I/O pushes this kernel past the HBM roofline.
    o_ref[...] = jnp.tanh(acc).astype(o_ref.dtype)


def _cdiv(a, b):
    return (a + b - 1) // b


def _round_up(a, b):
    return _cdiv(a, b) * b


def transcript_block(x, w, b, *, tile_rows=_TILE_ROWS, pack=_PACK,
                     out_dtype=None):
    """TranscriptBlock forward.

    x: [B, S, TR_DIM]; w: [TR_DIM, COMPUTE_DIM]  (transposed vs the (out, in)
    layout PyTorch nn.Linear stores); b: [COMPUTE_DIM].
    Returns [B, 1, S, COMPUTE_DIM]  ==  tanh(x @ w + b).unsqueeze(1).
    """
    B, S, D = x.shape
    assert D == w.shape[0], (D, w.shape)
    N = w.shape[1]
    out_dtype = x.dtype if out_dtype is None else out_dtype
    M = B * S

    x2d = x.reshape(M, D)
    rem = M % pack
    if rem:                                    # rare: <= pack-1 rows of padding
        x2d = jnp.pad(x2d, ((0, pack - rem), (0, 0)))
    mp = x2d.shape[0] // pack
    xp = x2d.reshape(mp, pack * D)             # contiguous reshape: free

    # Block-diagonal weight / tiled bias so the packed matmul equals the
    # per-row fc:  out_packed[i, p*N:(p+1)*N] = x[pack*i + p] @ W + b
    wbig = jnp.kron(jnp.eye(pack, dtype=w.dtype), w)          # (pack*D, pack*N)
    bbig = jnp.tile(b.reshape(1, N), (1, pack))                # (1, pack*N)

    # Packed-row tile.  Ragged last block is handled by Pallas (cdiv grid), so
    # there is no padding of x to a tile multiple and no output slice-copy.
    tmp_max = max(8, (tile_rows // pack) // 8 * 8)
    if mp <= 8:
        tmp = mp                               # single full-extent block
    else:
        # keep >= 2 grid steps when possible so the "parallel" axis can span
        # both TensorCores on v7x
        tmp = min(tmp_max, _round_up(_cdiv(mp, 2), 8))
    grid = _cdiv(mp, tmp)

    out_packed = pl.pallas_call(
        _fc_tanh_kernel,
        out_shape=jax.ShapeDtypeStruct((mp, pack * N), out_dtype),
        grid=(grid,),
        in_specs=[
            pl.BlockSpec((tmp, pack * D), lambda i: (i, 0)),       # streamed x
            pl.BlockSpec((pack * D, pack * N), lambda i: (0, 0)),  # resident W
            pl.BlockSpec((1, pack * N), lambda i: (0, 0)),         # resident b
        ],
        out_specs=pl.BlockSpec((tmp, pack * N), lambda i: (i, 0)),
        compiler_params=pltpu.CompilerParams(
            dimension_semantics=("parallel",)),
    )(xp, wbig, bbig)

    # Unpack lanes -> rows (contiguous reshape); drop the tiny pack pad if any.
    out2d = out_packed.reshape(mp * pack, N)
    if rem:
        out2d = out2d[:M]
    # unsqueeze(1): [B, S, N] -> [B, 1, S, N]
    return out2d.reshape(B, S, N)[:, None, :, :]


if __name__ == "__main__":
    key = jax.random.PRNGKey(0)
    kx, kw, kb, kx2 = jax.random.split(key, 4)

    # Deterministic parameters (mimic nn.Linear's uniform fan-in init).
    bound = 1.0 / (TR_DIM ** 0.5)
    # PyTorch weight is (out, in); the kernel takes the transposed (in, out) form.
    w = jax.random.uniform(kw, (TR_DIM, COMPUTE_DIM), jnp.float32,
                           minval=-bound, maxval=bound)
    b = jax.random.uniform(kb, (COMPUTE_DIM,), jnp.float32,
                           minval=-bound, maxval=bound)

    def ref(xv):
        return jnp.tanh(jnp.einsum("bsd,dn->bsn", xv, w) + b)[:, None, :, :]

    # Case 1: small shape from the module spec (single full-extent block).
    B, S = 2, 8
    x = jax.random.normal(kx, (B, S, TR_DIM), dtype=jnp.float32)
    out = jax.block_until_ready(transcript_block(x, w, b))
    assert out.shape == (B, 1, S, COMPUTE_DIM), out.shape
    assert jnp.allclose(out, ref(x), atol=1e-5), float(jnp.abs(out - ref(x)).max())

    # Case 2: exercises the no-pad ragged-final-block path (M % pack != 0,
    # multi-step grid with a partial last tile).
    B2, S2 = 3, 37
    x2 = jax.random.normal(kx2, (B2, S2, TR_DIM), dtype=jnp.float32)
    out2 = jax.block_until_ready(transcript_block(x2, w, b, tile_rows=64))
    assert out2.shape == (B2, 1, S2, COMPUTE_DIM), out2.shape
    assert jnp.allclose(out2, ref(x2), atol=1e-5), float(jnp.abs(out2 - ref(x2)).max())

    print("KERNEL_OK")
</pallas_src>

<mosaic_0001>
module attributes {stable_mosaic.version = 11 : i64} {
  func.func @_fc_tanh_kernel(%arg0: i32, %arg1: memref<4x128xf32, #tpu.memory_space<vmem>>, %arg2: memref<128x256xf32, #tpu.memory_space<vmem>>, %arg3: memref<1x256xf32, #tpu.memory_space<vmem>>, %arg4: memref<4x256xf32, #tpu.memory_space<vmem>>) attributes {dimension_semantics = [#tpu.dimension_semantics<parallel>], iteration_bounds = array<i64: 1>, scalar_prefetch = 0 : i64, scratch_operands = 0 : i64, tpu.core_type = #tpu.core_type<tc>, window_params = [{transform_indices = @transform_0, window_bounds = array<i64: 4, 128>}, {pipeline_mode = #tpu.pipeline_mode<synchronous>, transform_indices = @transform_1, window_bounds = array<i64: 128, 256>}, {pipeline_mode = #tpu.pipeline_mode<synchronous>, transform_indices = @transform_2, window_bounds = array<i64: 1, 256>}, {transform_indices = @transform_3, window_bounds = array<i64: 4, 256>}]} {
    %c0 = arith.constant 0 : index
    %c0_0 = arith.constant 0 : index
    %0 = vector.load %arg1[%c0, %c0_0] : memref<4x128xf32, #tpu.memory_space<vmem>>, vector<4x128xf32>
    %c0_1 = arith.constant 0 : index
    %c0_2 = arith.constant 0 : index
    %1 = vector.load %arg2[%c0_1, %c0_2] : memref<128x256xf32, #tpu.memory_space<vmem>>, vector<128x256xf32>
    %cst = arith.constant dense<0.000000e+00> : vector<4x256xf32>
    %2 = tpu.matmul %0, %1, %cst {dimension_numbers = #tpu.dot_dimension_numbers<[1], [0], [0], [1], [0, 0, 1, 1], [], []>} : vector<4x128xf32>, vector<128x256xf32>, vector<4x256xf32> -> vector<4x256xf32>
    %c0_3 = arith.constant 0 : index
    %c0_4 = arith.constant 0 : index
    %3 = vector.load %arg3[%c0_3, %c0_4] : memref<1x256xf32, #tpu.memory_space<vmem>>, vector<1x256xf32>
    %4 = vector.broadcast %3 : vector<1x256xf32> to vector<4x256xf32>
    %5 = arith.addf %2, %4 : vector<4x256xf32>
    %6 = math.tanh %5 : vector<4x256xf32>
    %c0_5 = arith.constant 0 : index
    %c0_6 = arith.constant 0 : index
    %7 = vector.load %arg4[%c0_5, %c0_6] : memref<4x256xf32, #tpu.memory_space<vmem>>, vector<4x256xf32>
    tpu.vector_store %arg4[%c0_5, %c0_6], %6 {strides = array<i32>} : memref<4x256xf32, #tpu.memory_space<vmem>>, vector<4x256xf32>,
    return
  }
  func.func @transform_0(%arg0: i32) -> (i32, i32) {
    %c0_i32 = arith.constant 0 : i32
    %c0_i32_0 = arith.constant 0 : i32
    return %arg0, %c0_i32 : i32, i32
  }
  func.func @transform_1(%arg0: i32) -> (i32, i32) {
    %c0_i32 = arith.constant 0 : i32
    %c0_i32_0 = arith.constant 0 : i32
    %c0_i32_1 = arith.constant 0 : i32
    return %c0_i32, %c0_i32_0 : i32, i32
  }
  func.func @transform_2(%arg0: i32) -> (i32, i32) {
    %c0_i32 = arith.constant 0 : i32
    %c0_i32_0 = arith.constant 0 : i32
    %c0_i32_1 = arith.constant 0 : i32
    return %c0_i32, %c0_i32_0 : i32, i32
  }
  func.func @transform_3(%arg0: i32) -> (i32, i32) {
    %c0_i32 = arith.constant 0 : i32
    %c0_i32_0 = arith.constant 0 : i32
    return %arg0, %c0_i32 : i32, i32
  }
}

</mosaic_0001>

<bundles_post_ra>
// kernel: tpu_custom_call.1
= control target key start
LH: loop header
LB: loop body
LE: loop exit
PB: predicated region body
PF: predicated region fallthrough
CT: control target
= control target key end

     0   :  { %8 = vsyncpa [#allocation3], 0  ;;  %s314_s0 = inlined_call_operand.hbm [shape: f32[4,128], index: 0, kind: input, shape index: {}]   ;;  %s315_s1 = inlined_call_operand.hbm [shape: f32[128,256], index: 1, kind: input, shape index: {}]   ;;  %s316_s2 = inlined_call_operand.hbm [shape: f32[1,256], index: 2, kind: input, shape index: {}]   ;;  %s317_s3 = inlined_call_operand.hbm [shape: f32[4,256], index: 3, kind: output, shape index: {}]  }
   0x1   :  { %9 = vsyncpa [#allocation6], 0  ;;  %s26_s14 = sshll.u32 %s315_s1, 4  ;;  %s27_s14 = int_to_ptr.hbm [resolvable:$true] %s26_s14 }
   0x2   :  { %10 = vsyncpa [#allocation4], 0  ;;  %s276_s15 = smov [#allocation5]   ;;  %s16_s19 = sshll.u32 %s314_s0, 4  ;;  %s17_s19 = int_to_ptr.hbm [resolvable:$true] %s16_s19 }
   0x3   :  { %s28_s16 = sshll.u32 %s276_s15, 4  ;;  %s277_s20 = smov 256   ;;  %s29_s16 = int_to_ptr.vmem [resolvable:$true] %s28_s16 }
   0x4   :  { %s278_s21 = smov 16   ;;  %s279_s22 = smov [#allocation2]  }
   0x5   :  { %34 = dma.hbm_to_vmem [thread:$0]  %s27_s14, 4096, %s29_s16, [#allocation6], %s277_s20, %s277_s20, %s278_s21  }
   0x6   :  { %s18_s23 = sshll.u32 %s279_s22, 4  ;;  %s40_s26 = sshll.u32 %s316_s2, 4  ;;  %s19_s23 = int_to_ptr.vmem [resolvable:$true] %s18_s23  ;;  %s41_s26 = int_to_ptr.hbm [resolvable:$true] %s40_s26 }
   0x7   :  { %21 = dma.hbm_to_vmem [thread:$0]  %s17_s19, 64, %s19_s23, [#allocation3]  }
   0x8   :  { %s280_s1 = smov [#allocation7]  }
   0x9   :  { %s42_s27 = sshll.u32 %s280_s1, 4  ;;  %s43_s27 = int_to_ptr.vmem [resolvable:$true] %s42_s27 }
   0xa   :  { %45 = dma.hbm_to_vmem [thread:$0]  %s41_s26, 32, %s43_s27, [#allocation6]  }
   0xb   :  { %270 = dma.done.wait [#allocation3], 64  }
   0xc   :  { %271 = vsyncadd [#allocation3], 4294967232 }
   0xd   :  { %272 = dma.done.wait [#allocation6], 4128  }
   0xe   :  { %273 = vsyncadd [#allocation6], 4294963168  ;;  %v90_v0 = vld [vmem:[#allocation5 + $0xf8] sm:$0xff]  ;;  %v89_v1 = vld [vmem:[#allocation5 + $0xf0] sm:$0xff]  ;;  %s281_s0 = smov [#allocation8]   ;;  %s153_s30 = sshll.u32 %s317_s3, 4  ;;  %s154_s30 = int_to_ptr.hbm [resolvable:$true] %s153_s30 }
   0xf   :  { %v88_v2 = vld [vmem:[#allocation5 + $0xe8] sm:$0xff]  ;;  %117 = vmatpush.msra.mxu1 %v90_v0  ;;  %97 = vmatpush.msra.mxu0 %v89_v1  ;;  %v87_v3 = vld [vmem:[#allocation5 + $0xe0] sm:$0xff]  ;;  %v86_v4 = vld [vmem:[#allocation5 + $0xd8] sm:$0xff]  ;;  %s151_s2 = sshll.u32 %s281_s0, 4  ;;  %vm142_vm0 = vcmask 1043456   ;;  %s152_s2 = int_to_ptr.vmem [resolvable:$true] %s151_s2 }
  0x10   :  { %v85_v5 = vld [vmem:[#allocation5 + $0xd0] sm:$0xff]  ;;  %v84_v6 = vld [vmem:[#allocation5 + $0xc8] sm:$0xff]  ;;  %v83_v7 = vld [vmem:[#allocation5 + $0xc0] sm:$0xff] }
  0x11   :  { %118 = vmatpush.msra.mxu1 %v88_v2  ;;  %98 = vmatpush.msra.mxu0 %v87_v3  ;;  %v82_v8 = vld [vmem:[#allocation5 + $0xb8] sm:$0xff]  ;;  %v81_v9 = vld [vmem:[#allocation5 + $0xb0] sm:$0xff]  ;;  %v80_v10 = vld [vmem:[#allocation5 + $0xa8] sm:$0xff] }
  0x12   :  { %v79_v11 = vld [vmem:[#allocation5 + $0xa0] sm:$0xff]  ;;  %v78_v12 = vld [vmem:[#allocation5 + $0x98] sm:$0xff]  ;;  %v77_v13 = vld [vmem:[#allocation5 + $0x90] sm:$0xff] }
  0x13   :  { %119 = vmatpush.msra.mxu1 %v86_v4  ;;  %99 = vmatpush.msra.mxu0 %v85_v5  ;;  %v76_v14 = vld [vmem:[#allocation5 + $0x88] sm:$0xff]  ;;  %v75_v15 = vld [vmem:[#allocation5 + $0x80] sm:$0xff]  ;;  %v74_v16 = vld [vmem:[#allocation5 + $0x78] sm:$0xff] }
  0x14   :  { %v73_v17 = vld [vmem:[#allocation5 + $0x70] sm:$0xff]  ;;  %v72_v18 = vld [vmem:[#allocation5 + $0x68] sm:$0xff]  ;;  %v71_v19 = vld [vmem:[#allocation5 + $0x60] sm:$0xff] }
  0x15   :  { %120 = vmatpush.msra.mxu1 %v84_v6  ;;  %100 = vmatpush.msra.mxu0 %v83_v7  ;;  %v70_v20 = vld [vmem:[#allocation5 + $0x58] sm:$0xff]  ;;  %v69_v21 = vld [vmem:[#allocation5 + $0x50] sm:$0xff]  ;;  %v68_v22 = vld [vmem:[#allocation5 + $0x48] sm:$0xff] }
  0x16   :  { %v67_v23 = vld [vmem:[#allocation5 + $0x40] sm:$0xff]  ;;  %v66_v24 = vld [vmem:[#allocation5 + $0x38] sm:$0xff]  ;;  %v65_v25 = vld [vmem:[#allocation5 + $0x30] sm:$0xff] }
  0x17   :  { %121 = vmatpush.msra.mxu1 %v82_v8  ;;  %101 = vmatpush.msra.mxu0 %v81_v9  ;;  %v64_v26 = vld [vmem:[#allocation5 + $0x28] sm:$0xff]  ;;  %v63_v27 = vld [vmem:[#allocation5 + $0x20] sm:$0xff]  ;;  %v62_v28 = vld [vmem:[#allocation5 + $0x18] sm:$0xff] }
  0x18   :  { %v61_v29 = vld [vmem:[#allocation5 + $0x10] sm:$0xff]  ;;  %v60_v30 = vld [vmem:[#allocation5 + $0x8] sm:$0xff]  ;;  %v59_v31 = vld [vmem:[#allocation5] sm:$0xff] }
  0x19   :  { %122 = vmatpush.msra.mxu1 %v80_v10  ;;  %102 = vmatpush.msra.mxu0 %v79_v11  ;;  %v58_v32 = vld [vmem:[#allocation2] sm:$0xf]  ;;  %v91_v33 = vld [vmem:[#allocation7] sm:$0x3] }
  0x1a   :  { %v94_v34 = vperm.slane %v91_v33, 1  ;;  %v93_v35 = vperm.slane %v91_v33, 0 }
  0x1b   :  { %123 = vmatpush.msra.mxu1 %v78_v12  ;;  %103 = vmatpush.msra.mxu0 %v77_v13 }
  0x1d   :  { %124 = vmatpush.msra.mxu1 %v76_v14  ;;  %104 = vmatpush.msra.mxu0 %v75_v15 }
  0x1f   :  { %125 = vmatpush.msra.mxu1 %v74_v16  ;;  %105 = vmatpush.msra.mxu0 %v73_v17 }
  0x21   :  { %126 = vmatpush.msra.mxu1 %v72_v18  ;;  %106 = vmatpush.msra.mxu0 %v71_v19 }
  0x23   :  { %127 = vmatpush.msra.mxu1 %v70_v20  ;;  %107 = vmatpush.msra.mxu0 %v69_v21 }
  0x25   :  { %128 = vmatpush.msra.mxu1 %v68_v22  ;;  %108 = vmatpush.msra.mxu0 %v67_v23 }
  0x27   :  { %129 = vmatpush.msra.mxu1 %v66_v24  ;;  %109 = vmatpush.msra.mxu0 %v65_v25 }
  0x29   :  { %130 = vmatpush.msra.mxu1 %v64_v26  ;;  %110 = vmatpush.msra.mxu0 %v63_v27 }
  0x2b   :  { %131 = vmatpush.msra.mxu1 %v62_v28  ;;  %111 = vmatpush.msra.mxu0 %v61_v29 }
  0x2d   :  { %132 = vmatpush.msra.mxu1 %v60_v30  ;;  %112 = vmatpush.msra.mxu0 %v59_v31 }
  0x2e   :  { %133 = vmatmul.f32.vlgmr.msra.gmra.mxu1 %v58_v32  ;;  %113 = vmatmul.f32.vlgmr.msra.gmra.mxu0 %v58_v32 }
  0xab   :  { %v134_v36 = vpop.f32.mrf.mxu1  ;;  %v114_v37 = vpop.f32.mrf.mxu0 }
  0xac   :  { %v135_v38 = vadd.f32 %v134_v36, %v94_v34  ;;  %v115_v39 = vadd.f32 %v114_v37, %v93_v35 }
  0xae   :  { %170 = vtanh.f32 %v135_v38 }
  0xaf   :  { %172 = vtanh.f32 %v115_v39 }
  0xb4   :  { %v171_v40 = vpop.eup %170 }
  0xb5   :  { %v173_v41 = vpop.eup %172  ;;  %v141_v42 = vrot.slane %v171_v40, 4 }
  0xb7   :  { %v143_v43 = vsel %vm142_vm0, %v173_v41, %v141_v42 }
  0xb8   :  { %145 = vst [vmem:[#allocation8] sm:$0xff] %v143_v43 }
  0xb9   :  { %156 = dma.vmem_to_hbm [thread:$0]  %s152_s2, 128, %s154_s30, [#allocation4]  }
  0xba   :  { %274 = dma.done.wait [#allocation4], 128  }
  0xbb   :  { %275 = vsyncadd [#allocation4], 4294967168 }
  0xbc   :  { %161 = vsyncpa [#allocation3], 1 }
  0xbd   :  { %162 = vsyncpa [#allocation6], 1 }
  0xbe   :  { %163 = vsyncpa [#allocation4], 1 }

</bundles_post_ra>
